<compile_context>
chip_gen: v7x
topology: tpu7x:2x2x1
jax: 0.10.0
libtpu: 0.0.40
codegen_flags: <defaults>
</compile_context>

<pallas_src>
import functools
import math

import jax
import jax.numpy as jnp
from jax import lax
from jax.experimental import pallas as pl
from jax.experimental.pallas import tpu as pltpu

SMOOTH = 1e-5
EPS = 1e-8


def _dice_partial_kernel(x_ref, t_ref, sel_out, p_out, cnt_out,
                         sel_acc, p_acc, cnt_acc,
                         *, hw, tile, tiles_per_chunk, need_mask):
    k = pl.program_id(2)                       # pixel-tile (reduction) axis

    @pl.when(k == 0)
    def _():
        sel_acc[...] = jnp.zeros_like(sel_acc)
        p_acc[...] = jnp.zeros_like(p_acc)
        cnt_acc[...] = jnp.zeros_like(cnt_acc)

    x = x_ref[...].astype(jnp.float32)         # (C, S, 128): class x sub x lane
    t = t_ref[...]                             # (1, S, 128) int32 target class
    C, S, L = x.shape

    if need_mask:
        chunk = pl.program_id(1)
        base = (chunk * tiles_per_chunk + k) * tile
        sub = lax.broadcasted_iota(jnp.int32, (1, S, L), 1)
        lane = lax.broadcasted_iota(jnp.int32, (1, S, L), 2)
        valid = (base + sub * L + lane) < hw   # (1, S, 128) bool
        # Select (NOT multiply): the OOB tail of the last block holds garbage
        # that must not reach exp() as NaN/Inf.
        x = jnp.where(valid, x, 0.0)

    # Softmax over classes (leading dim): C-1 elementwise max/adds, one EUP
    # exp pass, one (1,S,128) reciprocal -> C multiplies (no per-class divide).
    m = jnp.max(x, axis=0, keepdims=True)
    e = jnp.exp(x - m)
    s = jnp.sum(e, axis=0, keepdims=True)
    p = e * pl.reciprocal(s, approx=False)     # (C, S, 128)

    if need_mask:
        p = jnp.where(valid, p, 0.0)           # single mask; all sums inherit

    cls = lax.broadcasted_iota(jnp.int32, (C, S, L), 0)
    is_t = cls == t                            # one-hot of the target class

    sel_acc[...] += jnp.where(is_t, p, 0.0)    # sum of p at the target class
    p_acc[...] += p                            # sum of p  (FP = P - TP later)
    if need_mask:
        one_hot = jnp.where(jnp.logical_and(is_t, valid), 1.0, 0.0)
    else:
        one_hot = jnp.where(is_t, 1.0, 0.0)
    cnt_acc[...] += jnp.sum(one_hot, axis=1)   # per-class pixel counts (C,128)

    @pl.when(k == pl.num_programs(2) - 1)
    def _():
        # One sublane reduce per accumulator; the tiny cross-lane sum of the
        # (C,128) partials happens in the JAX epilogue.
        sel_out[...] = jnp.sum(sel_acc[...], axis=1)
        p_out[...] = jnp.sum(p_acc[...], axis=1)
        cnt_out[...] = cnt_acc[...]


def _pick_tile(c, hw_p, target_block_bytes=2 << 20, max_tile=131072):
    """Pixels per grid step: ~2 MiB preds block, multiple of 1024 so the
    sublane-chunk block dim is a multiple of 8 (the (8,128) rule)."""
    t = target_block_bytes // (4 * c)
    t = max(1024, min(max_tile, (t // 1024) * 1024))
    if hw_p <= t:
        return hw_p            # full spatial extent in one block (always legal)
    return t


def dice_loss(preds, targets):
    """preds: (N, C, H, W) or (N, C, D, H, W); targets: (N, spatial...) int.

    Matches DiceLoss.forward with the default args (reduce=True,
    size_average=True, weight=False).
    """
    # TODO(synk): non-default `weight`/`reduce=False` variants would only touch
    # the scalar JAX epilogue below, not the kernel.
    N, C = preds.shape[0], preds.shape[1]
    hw = math.prod(preds.shape[2:])

    x = preds.reshape(N, C, hw)                       # metadata-only (keep dtype)
    t = targets.reshape(N, 1, hw).astype(jnp.int32)

    # Lane-major view (N, C, HW/128, 128).  H*W is almost always 128-aligned;
    # if not, pad once (padded pixels are masked out in-kernel).
    hw_p = ((hw + 127) // 128) * 128
    if hw_p != hw:
        x = jnp.pad(x, ((0, 0), (0, 0), (0, hw_p - hw)))
        t = jnp.pad(t, ((0, 0), (0, 0), (0, hw_p - hw)))
    s_total = hw_p // 128
    x = x.reshape(N, C, s_total, 128)
    t = t.reshape(N, 1, s_total, 128)

    tile = _pick_tile(C, hw_p)
    s_tile = tile // 128
    num_tiles = pl.cdiv(hw_p, tile)

    # Second parallel axis: lets a single-image (or odd-N) call occupy both
    # TensorCores on multi-core parts (v7x); harmless on v5e/v6e.
    num_chunks = 2 if (num_tiles >= 2 and num_tiles % 2 == 0) else 1
    tiles_per_chunk = num_tiles // num_chunks

    need_mask = (num_chunks * tiles_per_chunk * tile) != hw

    kernel = functools.partial(
        _dice_partial_kernel,
        hw=hw, tile=tile, tiles_per_chunk=tiles_per_chunk, need_mask=need_mask)

    out_shape = jax.ShapeDtypeStruct((N, num_chunks, C, 128), jnp.float32)
    out_spec = pl.BlockSpec((None, None, C, 128), lambda n, c, k: (n, c, 0, 0))

    sel_p, p_p, cnt_p = pl.pallas_call(
        kernel,
        out_shape=(out_shape, out_shape, out_shape),
        grid_spec=pltpu.PrefetchScalarGridSpec(
            num_scalar_prefetch=0,
            grid=(N, num_chunks, tiles_per_chunk),
            in_specs=[
                pl.BlockSpec(
                    (None, C, s_tile, 128),
                    lambda n, c, k: (n, 0, c * tiles_per_chunk + k, 0)),
                pl.BlockSpec(
                    (None, 1, s_tile, 128),
                    lambda n, c, k: (n, 0, c * tiles_per_chunk + k, 0)),
            ],
            out_specs=[out_spec, out_spec, out_spec],
            scratch_shapes=[
                pltpu.VMEM((C, s_tile, 128), jnp.float32),  # sum p @ target
                pltpu.VMEM((C, s_tile, 128), jnp.float32),  # sum p
                pltpu.VMEM((C, 128), jnp.float32),          # per-class counts
            ],
        ),
        compiler_params=pltpu.CompilerParams(
            dimension_semantics=("parallel", "parallel", "arbitrary"),
            vmem_limit_bytes=48 * 1024 * 1024,
        ),
    )(x, t)

    # Tiny JAX epilogue.  Exact identities reconstruct the torch quantities:
    #   TP = (1-EPS)*sel + EPS*P ;  CM = (1-EPS)*count + EPS*n_pix
    #   FP = P - TP              ;  FN = CM - TP
    sel_s = jnp.sum(sel_p, axis=(0, 1, 3))
    p_s = jnp.sum(p_p, axis=(0, 1, 3))
    cnt_s = jnp.sum(cnt_p, axis=(0, 1, 3))
    n_pix = jnp.float32(N * hw)

    tp = (1.0 - EPS) * sel_s + EPS * p_s
    cm = (1.0 - EPS) * cnt_s + EPS * n_pix
    fp = p_s - tp
    fn = cm - tp
    alpha = jnp.clip(fp / (fp + fn + SMOOTH), 0.2, 0.8)
    beta = 1.0 - alpha
    den = tp + alpha * fp + beta * fn
    dice = tp / (den + SMOOTH)
    # reduce=True, size_average=True, weight=False  =>  sum(1 - dice) / C
    return jnp.sum(1.0 - dice) / jnp.float32(C)


def dice_loss_ref(preds, targets):
    """Pure-JAX reference mirroring the PyTorch forward."""
    C = preds.shape[1]
    if preds.ndim == 5:
        x = jnp.transpose(preds, (0, 2, 3, 4, 1)).reshape(-1, C)
    else:
        x = jnp.transpose(preds, (0, 2, 3, 1)).reshape(-1, C)
    x = x.astype(jnp.float32)
    t = targets.reshape(-1, 1)
    log_p = jax.nn.log_softmax(x, axis=1)
    p = jnp.exp(log_p)
    cmk = jnp.where(jnp.arange(C)[None, :] == t, 1.0, EPS)
    tp = jnp.sum(p * cmk, axis=0)
    fp = jnp.sum(p * (1.0 - cmk), axis=0)
    fn = jnp.sum((1.0 - p) * cmk, axis=0)
    alpha = jnp.clip(fp / (fp + fn + SMOOTH), 0.2, 0.8)
    beta = 1.0 - alpha
    num = tp
    den = num + alpha * fp + beta * fn
    dice = num / (den + SMOOTH)
    return jnp.sum(1.0 - dice) / C


if __name__ == "__main__":
    key = jax.random.PRNGKey(0)
    k1, k2 = jax.random.split(key)
    N, C, H, W = 2, 4, 16, 16
    preds = jax.random.normal(k1, (N, C, H, W), dtype=jnp.float32)
    targets = jax.random.randint(k2, (N, H, W), 0, C, dtype=jnp.int32)

    loss = dice_loss(preds, targets)
    jax.block_until_ready(loss)

    ref = dice_loss_ref(preds, targets)
    assert jnp.allclose(loss, ref, rtol=1e-4, atol=1e-5), (loss, ref)
    print("KERNEL_OK")
</pallas_src>

<mosaic_0001>
module attributes {stable_mosaic.version = 11 : i64} {
  func.func @_dice_partial_kernel(%arg0: i32, %arg1: i32, %arg2: i32, %arg3: memref<1x4x2x128xf32, #tpu.memory_space<vmem>>, %arg4: memref<1x1x2x128xi32, #tpu.memory_space<vmem>>, %arg5: memref<1x1x4x128xf32, #tpu.memory_space<vmem>>, %arg6: memref<1x1x4x128xf32, #tpu.memory_space<vmem>>, %arg7: memref<1x1x4x128xf32, #tpu.memory_space<vmem>>, %arg8: memref<4x2x128xf32, #tpu.memory_space<vmem>>, %arg9: memref<4x2x128xf32, #tpu.memory_space<vmem>>, %arg10: memref<4x128xf32, #tpu.memory_space<vmem>>) attributes {dimension_semantics = [#tpu.dimension_semantics<parallel>, #tpu.dimension_semantics<parallel>, #tpu.dimension_semantics<arbitrary>], iteration_bounds = array<i64: 2, 1, 1>, scalar_prefetch = 0 : i64, scratch_operands = 3 : i64, tpu.core_type = #tpu.core_type<tc>, window_params = [{transform_indices = @transform_0, window_bounds = array<i64: 1, 4, 2, 128>}, {transform_indices = @transform_1, window_bounds = array<i64: 1, 1, 2, 128>}, {transform_indices = @transform_2, window_bounds = array<i64: 1, 1, 4, 128>}, {transform_indices = @transform_3, window_bounds = array<i64: 1, 1, 4, 128>}, {transform_indices = @transform_4, window_bounds = array<i64: 1, 1, 4, 128>}]} {
    %c0_i32 = arith.constant 0 : i32
    %0 = arith.cmpi eq, %arg2, %c0_i32 : i32
    %1 = arith.extui %0 : i1 to i32
    %c0_i32_0 = arith.constant 0 : i32
    %2 = arith.cmpi ne, %1, %c0_i32_0 : i32
    scf.if %2 {
      %cst_31 = arith.constant 0.000000e+00 : f32
      %38 = vector.broadcast %cst_31 : f32 to vector<4x2x128xf32>
      %c0_32 = arith.constant 0 : index
      %c0_33 = arith.constant 0 : index
      %c0_34 = arith.constant 0 : index
      %39 = vector.load %arg8[%c0_32, %c0_33, %c0_34] : memref<4x2x128xf32, #tpu.memory_space<vmem>>, vector<4x2x128xf32>
      tpu.vector_store %arg8[%c0_32, %c0_33, %c0_34], %38 {strides = array<i32>} : memref<4x2x128xf32, #tpu.memory_space<vmem>>, vector<4x2x128xf32>,
      %cst_35 = arith.constant 0.000000e+00 : f32
      %40 = vector.broadcast %cst_35 : f32 to vector<4x2x128xf32>
      %c0_36 = arith.constant 0 : index
      %c0_37 = arith.constant 0 : index
      %c0_38 = arith.constant 0 : index
      %41 = vector.load %arg9[%c0_36, %c0_37, %c0_38] : memref<4x2x128xf32, #tpu.memory_space<vmem>>, vector<4x2x128xf32>
      tpu.vector_store %arg9[%c0_36, %c0_37, %c0_38], %40 {strides = array<i32>} : memref<4x2x128xf32, #tpu.memory_space<vmem>>, vector<4x2x128xf32>,
      %cst_39 = arith.constant 0.000000e+00 : f32
      %42 = vector.broadcast %cst_39 : f32 to vector<4x128xf32>
      %c0_40 = arith.constant 0 : index
      %c0_41 = arith.constant 0 : index
      %43 = vector.load %arg10[%c0_40, %c0_41] : memref<4x128xf32, #tpu.memory_space<vmem>>, vector<4x128xf32>
      tpu.vector_store %arg10[%c0_40, %c0_41], %42 {strides = array<i32>} : memref<4x128xf32, #tpu.memory_space<vmem>>, vector<4x128xf32>,
    } else {
    }
    %c0 = arith.constant 0 : index
    %c0_1 = arith.constant 0 : index
    %c0_2 = arith.constant 0 : index
    %c0_3 = arith.constant 0 : index
    %3 = vector.load %arg3[%c0, %c0_1, %c0_2, %c0_3] : memref<1x4x2x128xf32, #tpu.memory_space<vmem>>, vector<1x4x2x128xf32>
    %4 = vector.shape_cast %3 : vector<1x4x2x128xf32> to vector<4x2x128xf32>
    %c0_4 = arith.constant 0 : index
    %c0_5 = arith.constant 0 : index
    %c0_6 = arith.constant 0 : index
    %c0_7 = arith.constant 0 : index
    %5 = vector.load %arg4[%c0_4, %c0_5, %c0_6, %c0_7] : memref<1x1x2x128xi32, #tpu.memory_space<vmem>>, vector<1x1x2x128xi32>
    %6 = vector.shape_cast %5 : vector<1x1x2x128xi32> to vector<1x2x128xi32>
    %cst = arith.constant dense<0xFF800000> : vector<2x128xf32>
    %7 = vector.multi_reduction <maximumf>, %4, %cst [0] : vector<4x2x128xf32> to vector<2x128xf32>
    %8 = vector.shape_cast %7 : vector<2x128xf32> to vector<1x2x128xf32>
    %9 = vector.broadcast %8 : vector<1x2x128xf32> to vector<4x2x128xf32>
    %10 = arith.subf %4, %9 : vector<4x2x128xf32>
    %11 = math.exp %10 : vector<4x2x128xf32>
    %cst_8 = arith.constant dense<0.000000e+00> : vector<2x128xf32>
    %12 = vector.multi_reduction <add>, %11, %cst_8 [0] : vector<4x2x128xf32> to vector<2x128xf32>
    %13 = vector.shape_cast %12 : vector<2x128xf32> to vector<1x2x128xf32>
    %14 = tpu.reciprocal %13 : vector<1x2x128xf32> -> vector<1x2x128xf32>
    %15 = vector.broadcast %14 : vector<1x2x128xf32> to vector<4x2x128xf32>
    %16 = arith.mulf %11, %15 : vector<4x2x128xf32>
    %17 = tpu.iota {dimensions = array<i32: 0>} : vector<4x2x128xi32>
    %18 = vector.broadcast %6 : vector<1x2x128xi32> to vector<4x2x128xi32>
    %19 = arith.cmpi eq, %17, %18 : vector<4x2x128xi32>
    %c0_9 = arith.constant 0 : index
    %c0_10 = arith.constant 0 : index
    %c0_11 = arith.constant 0 : index
    %20 = vector.load %arg8[%c0_9, %c0_10, %c0_11] : memref<4x2x128xf32, #tpu.memory_space<vmem>>, vector<4x2x128xf32>
    %cst_12 = arith.constant 0.000000e+00 : f32
    %21 = vector.broadcast %cst_12 : f32 to vector<4x2x128xf32>
    %22 = arith.select %19, %16, %21 : vector<4x2x128xi1>, vector<4x2x128xf32>
    %23 = arith.addf %20, %22 : vector<4x2x128xf32>
    %c0_13 = arith.constant 0 : index
    %c0_14 = arith.constant 0 : index
    %c0_15 = arith.constant 0 : index
    %24 = vector.load %arg8[%c0_13, %c0_14, %c0_15] : memref<4x2x128xf32, #tpu.memory_space<vmem>>, vector<4x2x128xf32>
    tpu.vector_store %arg8[%c0_13, %c0_14, %c0_15], %23 {strides = array<i32>} : memref<4x2x128xf32, #tpu.memory_space<vmem>>, vector<4x2x128xf32>,
    %c0_16 = arith.constant 0 : index
    %c0_17 = arith.constant 0 : index
    %c0_18 = arith.constant 0 : index
    %25 = vector.load %arg9[%c0_16, %c0_17, %c0_18] : memref<4x2x128xf32, #tpu.memory_space<vmem>>, vector<4x2x128xf32>
    %26 = arith.addf %25, %16 : vector<4x2x128xf32>
    %c0_19 = arith.constant 0 : index
    %c0_20 = arith.constant 0 : index
    %c0_21 = arith.constant 0 : index
    %27 = vector.load %arg9[%c0_19, %c0_20, %c0_21] : memref<4x2x128xf32, #tpu.memory_space<vmem>>, vector<4x2x128xf32>
    tpu.vector_store %arg9[%c0_19, %c0_20, %c0_21], %26 {strides = array<i32>} : memref<4x2x128xf32, #tpu.memory_space<vmem>>, vector<4x2x128xf32>,
    %cst_22 = arith.constant 1.000000e+00 : f32
    %cst_23 = arith.constant 0.000000e+00 : f32
    %28 = vector.broadcast %cst_22 : f32 to vector<4x2x128xf32>
    %29 = vector.broadcast %cst_23 : f32 to vector<4x2x128xf32>
    %30 = arith.select %19, %28, %29 : vector<4x2x128xi1>, vector<4x2x128xf32>
    %c0_24 = arith.constant 0 : index
    %c0_25 = arith.constant 0 : index
    %31 = vector.load %arg10[%c0_24, %c0_25] : memref<4x128xf32, #tpu.memory_space<vmem>>, vector<4x128xf32>
    %cst_26 = arith.constant dense<0.000000e+00> : vector<4x128xf32>
    %32 = vector.multi_reduction <add>, %30, %cst_26 [1] : vector<4x2x128xf32> to vector<4x128xf32>
    %33 = arith.addf %31, %32 : vector<4x128xf32>
    %c0_27 = arith.constant 0 : index
    %c0_28 = arith.constant 0 : index
    %34 = vector.load %arg10[%c0_27, %c0_28] : memref<4x128xf32, #tpu.memory_space<vmem>>, vector<4x128xf32>
    tpu.vector_store %arg10[%c0_27, %c0_28], %33 {strides = array<i32>} : memref<4x128xf32, #tpu.memory_space<vmem>>, vector<4x128xf32>,
    %c0_i32_29 = arith.constant 0 : i32
    %35 = arith.cmpi eq, %arg2, %c0_i32_29 : i32
    %36 = arith.extui %35 : i1 to i32
    %c0_i32_30 = arith.constant 0 : i32
    %37 = arith.cmpi ne, %36, %c0_i32_30 : i32
    scf.if %37 {
      %c0_31 = arith.constant 0 : index
      %c0_32 = arith.constant 0 : index
      %c0_33 = arith.constant 0 : index
      %38 = vector.load %arg8[%c0_31, %c0_32, %c0_33] : memref<4x2x128xf32, #tpu.memory_space<vmem>>, vector<4x2x128xf32>
      %cst_34 = arith.constant dense<0.000000e+00> : vector<4x128xf32>
      %39 = vector.multi_reduction <add>, %38, %cst_34 [1] : vector<4x2x128xf32> to vector<4x128xf32>
      %c0_35 = arith.constant 0 : index
      %c0_36 = arith.constant 0 : index
      %c0_37 = arith.constant 0 : index
      %c0_38 = arith.constant 0 : index
      %40 = vector.load %arg5[%c0_35, %c0_36, %c0_37, %c0_38] : memref<1x1x4x128xf32, #tpu.memory_space<vmem>>, vector<1x1x4x128xf32>
      %41 = vector.shape_cast %40 : vector<1x1x4x128xf32> to vector<4x128xf32>
      %42 = vector.shape_cast %39 : vector<4x128xf32> to vector<1x1x4x128xf32>
      tpu.vector_store %arg5[%c0_35, %c0_36, %c0_37, %c0_38], %42 {strides = array<i32>} : memref<1x1x4x128xf32, #tpu.memory_space<vmem>>, vector<1x1x4x128xf32>,
      %c0_39 = arith.constant 0 : index
      %c0_40 = arith.constant 0 : index
      %c0_41 = arith.constant 0 : index
      %43 = vector.load %arg9[%c0_39, %c0_40, %c0_41] : memref<4x2x128xf32, #tpu.memory_space<vmem>>, vector<4x2x128xf32>
      %cst_42 = arith.constant dense<0.000000e+00> : vector<4x128xf32>
      %44 = vector.multi_reduction <add>, %43, %cst_42 [1] : vector<4x2x128xf32> to vector<4x128xf32>
      %c0_43 = arith.constant 0 : index
      %c0_44 = arith.constant 0 : index
      %c0_45 = arith.constant 0 : index
      %c0_46 = arith.constant 0 : index
      %45 = vector.load %arg6[%c0_43, %c0_44, %c0_45, %c0_46] : memref<1x1x4x128xf32, #tpu.memory_space<vmem>>, vector<1x1x4x128xf32>
      %46 = vector.shape_cast %45 : vector<1x1x4x128xf32> to vector<4x128xf32>
      %47 = vector.shape_cast %44 : vector<4x128xf32> to vector<1x1x4x128xf32>
      tpu.vector_store %arg6[%c0_43, %c0_44, %c0_45, %c0_46], %47 {strides = array<i32>} : memref<1x1x4x128xf32, #tpu.memory_space<vmem>>, vector<1x1x4x128xf32>,
      %c0_47 = arith.constant 0 : index
      %c0_48 = arith.constant 0 : index
      %48 = vector.load %arg10[%c0_47, %c0_48] : memref<4x128xf32, #tpu.memory_space<vmem>>, vector<4x128xf32>
      %c0_49 = arith.constant 0 : index
      %c0_50 = arith.constant 0 : index
      %c0_51 = arith.constant 0 : index
      %c0_52 = arith.constant 0 : index
      %49 = vector.load %arg7[%c0_49, %c0_50, %c0_51, %c0_52] : memref<1x1x4x128xf32, #tpu.memory_space<vmem>>, vector<1x1x4x128xf32>
      %50 = vector.shape_cast %49 : vector<1x1x4x128xf32> to vector<4x128xf32>
      %51 = vector.shape_cast %48 : vector<4x128xf32> to vector<1x1x4x128xf32>
      tpu.vector_store %arg7[%c0_49, %c0_50, %c0_51, %c0_52], %51 {strides = array<i32>} : memref<1x1x4x128xf32, #tpu.memory_space<vmem>>, vector<1x1x4x128xf32>,
    } else {
    }
    return
  }
  func.func @transform_0(%arg0: i32, %arg1: i32, %arg2: i32) -> (i32, i32, i32, i32) {
    %c1_i32 = arith.constant 1 : i32
    %0 = arith.muli %arg1, %c1_i32 : i32
    %1 = arith.addi %0, %arg2 : i32
    %c0_i32 = arith.constant 0 : i32
    %c0_i32_0 = arith.constant 0 : i32
    %c0_i32_1 = arith.constant 0 : i32
    return %arg0, %c0_i32, %1, %c0_i32_0 : i32, i32, i32, i32
  }
  func.func @transform_1(%arg0: i32, %arg1: i32, %arg2: i32) -> (i32, i32, i32, i32) {
    %c1_i32 = arith.constant 1 : i32
    %0 = arith.muli %arg1, %c1_i32 : i32
    %1 = arith.addi %0, %arg2 : i32
    %c0_i32 = arith.constant 0 : i32
    %c0_i32_0 = arith.constant 0 : i32
    %c0_i32_1 = arith.constant 0 : i32
    return %arg0, %c0_i32, %1, %c0_i32_0 : i32, i32, i32, i32
  }
  func.func @transform_2(%arg0: i32, %arg1: i32, %arg2: i32) -> (i32, i32, i32, i32) {
    %c0_i32 = arith.constant 0 : i32
    %c0_i32_0 = arith.constant 0 : i32
    %c0_i32_1 = arith.constant 0 : i32
    return %arg0, %arg1, %c0_i32, %c0_i32_0 : i32, i32, i32, i32
  }
  func.func @transform_3(%arg0: i32, %arg1: i32, %arg2: i32) -> (i32, i32, i32, i32) {
    %c0_i32 = arith.constant 0 : i32
    %c0_i32_0 = arith.constant 0 : i32
    %c0_i32_1 = arith.constant 0 : i32
    return %arg0, %arg1, %c0_i32, %c0_i32_0 : i32, i32, i32, i32
  }
  func.func @transform_4(%arg0: i32, %arg1: i32, %arg2: i32) -> (i32, i32, i32, i32) {
    %c0_i32 = arith.constant 0 : i32
    %c0_i32_0 = arith.constant 0 : i32
    %c0_i32_1 = arith.constant 0 : i32
    return %arg0, %arg1, %c0_i32, %c0_i32_0 : i32, i32, i32, i32
  }
}

</mosaic_0001>

<bundles_post_ra>
// kernel: tpu_custom_call.1
= control target key start
LH: loop header
LB: loop body
LE: loop exit
PB: predicated region body
PF: predicated region fallthrough
CT: control target
= control target key end

     0   :  { %s1464_s0 = inlined_call_operand.hbm [shape: f32[2,4,2,128], index: 0, kind: input, shape index: {}]   ;;  %s1465_s1 = inlined_call_operand.hbm [shape: s32[2,1,2,128], index: 1, kind: input, shape index: {}]   ;;  %s1466_s2 = inlined_call_operand.hbm [shape: f32[2,1,4,128], index: 2, kind: output, shape index: {0}]   ;;  %s1467_s3 = inlined_call_operand.hbm [shape: f32[2,1,4,128], index: 3, kind: output, shape index: {1}]   ;;  %s1468_s4 = inlined_call_operand.hbm [shape: f32[2,1,4,128], index: 4, kind: output, shape index: {2}]  }
   0x1   :  { %1472 = sst [smem:[#allocation18_spill]] %s1464_s0 }
   0x2   :  { %10 = vsyncpa [#allocation6], 0 }
   0x3   :  { %12 = vsyncpa [#allocation6 + $0x1], 0 }
   0x4   :  { %13 = vsyncpa [#allocation9], 0 }
   0x5   :  { %15 = vsyncpa [#allocation9 + $0x1], 0 }
   0x6   :  { %16 = vsyncpa [#allocation7], 0 }
   0x7   :  { %18 = vsyncpa [#allocation7 + $0x1], 0 }
   0x8   :  { %19 = vsyncpa [#allocation12], 0 }
   0x9   :  { %21 = vsyncpa [#allocation12 + $0x1], 0  ;;  %s1106_s15 = smov 0   ;;  %s1108_s16 = smov 0  }
   0xa   :  { %s1110_s17 = smov 0   ;;  %s1112_s18 = smov 0  }
   0xb   :  { %s1114_s19 = smov 0   ;;  %s1116_s20 = smov 0  }
   0xc LB: > { %s1137_s21 = sadd.s32 4294967295, %s1071_s20   ;;  %s1470_s22 = sadd.s32 4294967294, %s1071_s20   ;;  %s1071_s20 = sphi %s1116_s20, %s27_s20   ;;  %s1067_s19 = sphi %s1114_s19, %s1491_s19   ;;  %s1063_s18 = sphi %s1112_s18, %s1490_s18   ;;  %s1059_s17 = sphi %s1110_s17, %s1489_s17   ;;  %s1055_s16 = sphi %s1108_s16, %s1488_s16   ;;  %s1051_s15 = sphi %s1106_s15, %s1487_s15  }
   0xd   : > { %s46_s23 = sadd.s32 1, %s1067_s19  ;;  %s57_s24 = sadd.s32 1, %s1059_s17 }
   0xe   : > { %p48_p0 = scmp.ge.s32.totalorder %s46_s23, 2  ;;  %p64_p1 = scmp.ne.s32.totalorder %s1059_s17, %s1055_s16 }
   0xf   : > { %p65_p2 = scmp.eq.s32.totalorder %s1071_s20, 0  ;;  %p70_p3 = scmp.ne.s32.totalorder %s1055_s16, %s1051_s15 }
  0x10   : > { %s1493_s23 = smov (%p48_p0, %s46_s23), 0  ;;  %p71_p5 = scmp.eq.s32.totalorder %s1137_s21, 0 }
  0x11   : > { %p1149_p4 = por %p65_p2, %p64_p1  ;;  %s52_s26 = ssub.s32 %s1067_s19, %s1493_s23 }
  0x12   : > { %p126_p6 = scmp.eq.s32.totalorder %s1137_s21, 1  ;;  %p55_p7 = scmp.eq.s32.totalorder %s52_s26, 0 }
  0x13   : > { %p1157_p8 = por %p71_p5, %p70_p3  ;;  %p132_p10 = scmp.eq.s32.totalorder %s1470_s22, 1 }
  0x14   : > { %p1161_p9 = por %p126_p6, %p64_p1  ;;  %p802_p13 = scmp.lt.s32.totalorder %s1071_s20, 2 }
  0x15   : > { %s1474_s27 = scalar_select %p1157_p8, 1, 0 }
  0x16   : > { %s1475_s28 = scalar_select %p1161_p9, 1, 0 }
  0x17   : > { %s1168_s29 = scalar_select %p55_p7, %s1059_s17, %s57_s24  }
  0x18   : > { %p1170_p11 = por %p132_p10, %p70_p3  ;;  %s1177_s5 = sand.u32 1, %s1059_s17  }
  0x19   : > { %s755_s6 = sshll.u32 %s1177_s5, 3  ;;  %s774_s7 = sshll.u32 %s1067_s19, 7 }
  0x1a   : > { %s1476_s30 = scalar_select %p1170_p11, 1, 0 }
  0x1b   : > { %s1477_s0 = sld [smem:[#allocation18_spill]]  ;;  %s212_s11 = scalar_lea.vmem [#allocation5], %s755_s6 }
  0x1c   : > { %s221_s12 = sshll.u32 %s212_s11, 4  ;;  %p1190_p0 = pnand %p802_p13, %p1149_p4  ;;  %s1186_s12 = int_to_ptr.vmem [resolvable:$true] %s221_s12 }
  0x1d   : > { %s209_s14 = scalar_lea.sflag [#allocation6], %s1177_s5 }
  0x1e   : > { %p867_p3 = pneg %p1190_p0 }
  0x21   : > { %s1184_s10 = scalar_lea.hbm %s1477_s0, %s774_s7  ;;  %s870_s25 = scalar_lea.hbm %s1477_s0, 256 }
  0x22   : > { %s865_s24 = scalar_lea.hbm %s1184_s10, 128  ;;  %p871_p4 = scmp.lt.u32.totalorder %s1184_s10, %s1477_s0 }
  0x23   : > { %p866_p2 = scmp.ne.s32.totalorder %s1184_s10, %s865_s24  ;;  %p872_p7 = scmp.lt.u32.totalorder %s870_s25, %s865_s24 }
  0x24   : > { %p874_p13 = scmp.lt.u32.totalorder %s865_s24, %s1184_s10 }
  0x25   : > { %p868_p5 = pnand %p867_p3, %p866_p2  ;;  %p873_p10 = por %p872_p7, %p871_p4 }
  0x27   : > { %p869_p6 = pneg %p868_p5  ;;  %p875_p12 = por %p874_p13, %p873_p10 }
  0x29   : > { %p876_p1 = pnand %p875_p12, %p869_p6 }
  0x2b   : > { %879 = shalt.err (!%p876_p1)
}
  0x2c   : > { %s880_s9 = scalar_lea.vmem %s1186_s12, 128  ;;  %s1073_s11 = smov [#allocation5]  }
  0x2d   : > { %p881_p2 = scmp.ne.s32.totalorder %s1186_s12, %s880_s9  ;;  %s885_s26 = sshll.u32 %s1073_s11, 4  ;;  %s886_s26 = int_to_ptr.vmem [resolvable:$false] %s885_s26 }
  0x2e   : > { %s887_s6 = scalar_lea.vmem %s886_s26, 256  ;;  %p888_p9 = scmp.lt.s32.totalorder %s1186_s12, %s886_s26 }
  0x2f   : > { %p883_p5 = pnand %p881_p2, %p867_p3  ;;  %p889_p4 = scmp.lt.s32.totalorder %s887_s6, %s880_s9 }
  0x31   : > { %p884_p11 = pneg %p883_p5  ;;  %p890_p7 = por %p889_p4, %p888_p9 }
  0x33   : > { %p891_p10 = pnand %p890_p7, %p884_p11 }
  0x35   : > { %894 = shalt.err (!%p891_p10)
}
  0x36   : > { %s1074_s24 = smov 32   ;;  %s1075_s25 = smov 2  }
  0x37   : > { %788 = dma.hbm_to_vmem [thread:$0]  (!%p1190_p0), %s1184_s10, 128, %s1186_s12, %s209_s14, %s1074_s24, %s1074_s24, %s1075_s25  }
  0x38   : > { %p249_p12 = scmp.lt.s32.totalorder %s1071_s20, 3  ;;  %s758_s7 = sshll.u32 %s1177_s5, 1 }
  0x39   : > { %s759_s8 = sshll.u32 %s1067_s19, 5  ;;  %p1479_p9 = scmp.ge.s32.totalorder %s1071_s20, 1 }
  0x3a   : > { %s1235_s6 = scalar_lea.hbm %s1465_s1, %s759_s8  ;;  %s235_s22 = scalar_lea.vmem [#allocation8], %s758_s7 }
  0x3b   : > { %p1228_p11 = pnand %p1479_p9, %p249_p12  ;;  %s244_s0 = sshll.u32 %s235_s22, 4  ;;  %s245_s0 = int_to_ptr.vmem [resolvable:$true] %s244_s0 }
  0x3c   : > { %s232_s10 = scalar_lea.sflag [#allocation9], %s1177_s5  ;;  %s895_s12 = scalar_lea.hbm %s1235_s6, 32 }
  0x3d   : > { %s1480_s9 = scalar_select %p1228_p11, 1, 0 }
  0x3e   : > { %p896_p1 = scmp.ne.s32.totalorder %s1235_s6, %s895_s12  ;;  %s900_s25 = scalar_lea.hbm %s1465_s1, 64 }
  0x3f   : > { %p901_p2 = scmp.lt.u32.totalorder %s1235_s6, %s1465_s1  ;;  %p902_p5 = scmp.lt.u32.totalorder %s900_s25, %s895_s12 }
  0x40   : > { %p898_p6 = pnand %p896_p1, %p867_p3  ;;  %p904_p7 = scmp.lt.u32.totalorder %s895_s12, %s1235_s6 }
  0x41   : > { %p903_p4 = por %p902_p5, %p901_p2 }
  0x42   : > { %p899_p13 = pneg %p898_p6 }
  0x43   : > { %p905_p10 = por %p904_p7, %p903_p4 }
  0x45   : > { %p906_p12 = pnand %p905_p10, %p899_p13 }
  0x47   : > { %909 = shalt.err (!%p906_p12)
}
  0x48   : > { %s910_s22 = scalar_lea.vmem %s245_s0, 32  ;;  %s1076_s5 = smov [#allocation8]  }
  0x49   : > { %p911_p9 = scmp.ne.s32.totalorder %s245_s0, %s910_s22  ;;  %s915_s7 = sshll.u32 %s1076_s5, 4  ;;  %s916_s7 = int_to_ptr.vmem [resolvable:$false] %s915_s7 }
  0x4a   : > { %s917_s26 = scalar_lea.vmem %s916_s7, 64  ;;  %p918_p8 = scmp.lt.s32.totalorder %s245_s0, %s916_s7 }
  0x4b   : > { %p913_p1 = pnand %p911_p9, %p867_p3  ;;  %p919_p11 = scmp.lt.s32.totalorder %s917_s26, %s910_s22 }
  0x4d   : > { %p914_p6 = pneg %p913_p1  ;;  %p920_p2 = por %p919_p11, %p918_p8 }
  0x4f   : > { %p921_p5 = pnand %p920_p2, %p914_p6 }
  0x51   : > { %924 = shalt.err (!%p921_p5)
}
  0x52   : > { %791 = dma.hbm_to_vmem [thread:$0]  (!%p1190_p0), %s1235_s6, 32, %s245_s0, %s232_s10  }
  0x53   : > { %p1481_p13 = scmp.ne.s32.totalorder %s1480_s9, 0 }
  0x54   : > { %s1260_s12 = sand.u32 (!%p1481_p13), 1, %s1055_s16   ;;  %p1482_p3 = scmp.ne.s32.totalorder (!%p1481_p13), %s1474_s27, 0 }
  0x55   : > { %253 = sbr.rel (%p1481_p13) target bundleno = 227 (0xe3), region = 28  ;;  %s761_s14 = sshll.u32 (!%p1481_p13), %s1260_s12, 3 }
  0x56   : > { %s256_s24 = scalar_lea.sflag (!%p1481_p13), [#allocation6], %s1260_s12  ;;  %s259_s25 = scalar_lea.vmem (!%p1481_p13), [#allocation5], %s761_s14 }
  0x5c   : > { %1034 = dma.done.wait (%p1482_p3), %s256_s24, 128  }
  0x5d   : > { %1036 = vsyncadd (%p1482_p3), %s256_s24, 4294967168  ;;  %s762_s0 = sshll.u32 %s1260_s12, 1  ;;  %s265_s13 = scalar_lea.sflag [#allocation9], %s1260_s12 }
  0x5e   : > { %s268_s9 = scalar_lea.vmem [#allocation8], %s762_s0 }
  0x5f   : > { %1038 = dma.done.wait (%p1482_p3), %s265_s13, 32  }
  0x60   : > { %1040 = vsyncadd (%p1482_p3), %s265_s13, 4294967264  ;;  %v1077_v0 = vmov 0.0   ;;  %vm328_vm0 = vcmask 1041408   ;;  %v323_v1 = vld [vmem:[%s259_s25] sm:$0x3]  ;;  %vm429_vm5 = vcmask 1041409  }
  0x61   : > { %318 = vst [vmem:[#allocation3] sm:$0x3] %v1077_v0  ;;  %314 = vst [vmem:[#allocation2] sm:$0x3] %v1077_v0  ;;  %v324_v2 = vld [vmem:[%s259_s25 + $0x2] sm:$0x3] }
  0x62   : > { %315 = vst [vmem:[#allocation2 + $0x2] sm:$0x3] %v1077_v0  ;;  %316 = vst [vmem:[#allocation2 + $0x4] sm:$0x3] %v1077_v0  ;;  %v325_v3 = vld [vmem:[%s259_s25 + $0x4] sm:$0x3] }
  0x63   : > { %317 = vst [vmem:[#allocation2 + $0x6] sm:$0x3] %v1077_v0  ;;  %319 = vst [vmem:[#allocation3 + $0x2] sm:$0x3] %v1077_v0  ;;  %v326_v4 = vld [vmem:[%s259_s25 + $0x6] sm:$0x3] }
  0x64   : > { %320 = vst [vmem:[#allocation3 + $0x4] sm:$0x3] %v1077_v0  ;;  %321 = vst [vmem:[#allocation3 + $0x6] sm:$0x3] %v1077_v0  ;;  %v329_v5 = vsel %vm328_vm0, %v323_v1, -inf  ;;  %v330_v6 = vsel %vm328_vm0, %v324_v2, -inf }
  0x65   : > { %322 = vst [vmem:[#allocation4] sm:$0xf] %v1077_v0  ;;  %v331_v7 = vsel %vm328_vm0, %v325_v3, -inf  ;;  %v332_v8 = vsel %vm328_vm0, %v326_v4, -inf  ;;  %v333_v9 = vmax.f32 %v329_v5, %v330_v6  ;;  %v1278_v11 = vld [vmem:[%s268_s9] sm:$0x3] }
  0x66   : > { %v334_v10 = vmax.f32 %v331_v7, %v332_v8  ;;  %vm360_vm1 = vcmp.eq.s32.totalorder %v1278_v11, 0  ;;  %vm361_vm2 = vcmp.eq.s32.totalorder %v1278_v11, 1  ;;  %vm362_vm3 = vcmp.eq.s32.totalorder %v1278_v11, 2  ;;  %s1304_s27 = sshll.u32 %s1260_s12, 2  ;;  %s530_s11 = sand.u32 1, %s1137_s21  }
  0x67   : > { %v392_v13 = vsel %vm360_vm1, 1.0, %v1077_v0  ;;  %v393_v14 = vsel %vm361_vm2, 1.0, %v1077_v0  ;;  %v394_v17 = vsel %vm362_vm3, 1.0, %v1077_v0  ;;  %vm363_vm4 = vcmp.eq.s32.totalorder %v1278_v11, 3  ;;  %s307_s6 = scalar_lea.vmem [#allocation13], %s1304_s27  ;;  %s300_s10 = scalar_lea.vmem [#allocation11], %s1304_s27 }
  0x68   : > { %v335_v12 = vmax.f32 %v333_v9, %v334_v10  ;;  %v397_v15 = vsel %vm328_vm0, %v392_v13, 0.0  ;;  %v404_v16 = vsel %vm328_vm0, %v393_v14, 0.0  ;;  %v411_v24 = vsel %vm328_vm0, %v394_v17, 0.0  ;;  %v380_v6 = vld [vmem:[#allocation3] sm:$0x3]  ;;  %s564_s8 = sshll.u32 %s300_s10, 4  ;;  %s1335_s8 = int_to_ptr.vmem [resolvable:$true] %s564_s8 }
  0x69   : > { %v398_v22 = vrot.slane %v397_v15, 4  ;;  %v405_v23 = vrot.slane %v404_v16, 4  ;;  %v395_v25 = vsel %vm363_vm4, 1.0, %v1077_v0  ;;  %v412_v32 = vrot.slane %v411_v24, 4  ;;  %v365_v17 = vld [vmem:[#allocation2 + $0x2] sm:$0x3] }
  0x6a   : > { %v336_v18 = vsub.f32 %v323_v1, %v335_v12  ;;  %v337_v19 = vsub.f32 %v324_v2, %v335_v12  ;;  %v338_v20 = vsub.f32 %v325_v3, %v335_v12  ;;  %v339_v21 = vsub.f32 %v326_v4, %v335_v12  ;;  %v381_v8 = vld [vmem:[#allocation3 + $0x2] sm:$0x3]  ;;  %s1330_s22 = sshll.u32 %s1063_s18, 6  ;;  %s578_s5 = sshll.u32 %s307_s6, 4  ;;  %s1348_s5 = int_to_ptr.vmem [resolvable:$true] %s578_s5 }
  0x6b   : > { %v399_v30 = vadd.f32 %v398_v22, %v397_v15  ;;  %v406_v31 = vadd.f32 %v405_v23, %v404_v16  ;;  %v418_v33 = vsel %vm328_vm0, %v395_v25, 0.0  ;;  %v413_v36 = vadd.f32 %v412_v32, %v411_v24  ;;  %v382_v9 = vld [vmem:[#allocation3 + $0x4] sm:$0x3]  ;;  %v383_v10 = vld [vmem:[#allocation3 + $0x6] sm:$0x3]  ;;  %s293_s7 = scalar_lea.vmem [#allocation10], %s1304_s27  ;;  %s1345_s14 = scalar_lea.hbm %s1467_s3, %s1330_s22 }
  0x6c   : > { %v340_v26 = vmul.f32 1.442695, %v336_v18  ;;  %v342_v27 = vmul.f32 1.442695, %v337_v19  ;;  %v344_v28 = vmul.f32 1.442695, %v338_v20  ;;  %s1354_s0 = scalar_lea.hbm %s1468_s4, %s1330_s22 }
  0x6d   : > { %v346_v29 = vmul.f32 1.442695, %v339_v21  ;;  %v400_v34 = vrot.slane %v399_v30, 2  ;;  %v407_v35 = vrot.slane %v406_v31, 2  ;;  %v419_v37 = vrot.slane %v418_v33, 4  ;;  %s550_s18 = sshll.u32 %s293_s7, 4  ;;  %s1358_s18 = int_to_ptr.vmem [resolvable:$true] %s550_s18 }
  0x6e   : > { %855 = vpow2.f32 %v340_v26  ;;  %v414_v40 = vrot.slane %v413_v36, 2  ;;  %vm431_vm6 = vcmask 1042434   ;;  %vm433_vm7 = vcmask 1043459   ;;  %v396_v59 = vld [vmem:[#allocation4] sm:$0xf]  ;;  %s1360_s13 = scalar_lea.sflag [#allocation12], %s530_s11 }
  0x6f   : > { %857 = vpow2.f32 %v342_v27  ;;  %v401_v38 = vadd.f32 %v400_v34, %v399_v30  ;;  %v408_v39 = vadd.f32 %v407_v35, %v406_v31  ;;  %v420_v41 = vadd.f32 %v419_v37, %v418_v33  ;;  %v364_v16 = vld [vmem:[#allocation2] sm:$0x3]  ;;  %v366_v18 = vld [vmem:[#allocation2 + $0x4] sm:$0x3]  ;;  %v367_v19 = vld [vmem:[#allocation2 + $0x6] sm:$0x3] }
  0x70   : > { %859 = vpow2.f32 %v344_v28  ;;  %v415_v44 = vadd.f32 %v414_v40, %v413_v36  ;;  %s925_s9 = scalar_lea.vmem %s1335_s8, 64  ;;  %p1483_p0 = scmp.ne.s32.totalorder %s1475_s28, 0 }
  0x71   : > { %861 = vpow2.f32 %v346_v29  ;;  %v402_v42 = vrot.slane %v401_v38, 1  ;;  %v409_v43 = vrot.slane %v408_v39, 1  ;;  %v421_v45 = vrot.slane %v420_v41, 2  ;;  %p926_p8 = scmp.ne.s32.totalorder %s1335_s8, %s925_s9 }
  0x72   : > { %v416_v48 = vrot.slane %v415_v44, 1 }
  0x73   : > { %v403_v46 = vadd.f32 %v402_v42, %v401_v38  ;;  %v410_v47 = vadd.f32 %v409_v43, %v408_v39  ;;  %v422_v49 = vadd.f32 %v421_v45, %v420_v41  ;;  %p927_p11 = pnand %p926_p8, %p1483_p0 }
  0x74   : > { %v417_v50 = vadd.f32 %v416_v48, %v415_v44 }
  0x75   : > { %v430_v51 = vsel %vm429_vm5, %v410_v47, %v403_v46  ;;  %v423_v53 = vrot.slane %v422_v49, 1  ;;  %p928_p4 = pneg %p927_p11 }
  0x76   : > { %v432_v56 = vsel %vm431_vm6, %v417_v50, %v430_v51 }
  0x77   : > { %v424_v60 = vadd.f32 %v423_v53, %v422_v49 }
  0x78   : > { %v856_v52 = vpop.eup %855 }
  0x79   : > { %v858_v54 = vpop.eup %857  ;;  %v348_v55 = vsel %vm328_vm0, %v856_v52, 0.0  ;;  %v434_v1 = vsel %vm433_vm7, %v424_v60, %v432_v56 }
  0x7a   : > { %v860_v57 = vpop.eup %859  ;;  %v349_v58 = vsel %vm328_vm0, %v858_v54, 0.0  ;;  %v436_v3 = vadd.f32 %v434_v1, %v396_v59 }
  0x7b   : > { %v862_v61 = vpop.eup %861  ;;  %v350_v62 = vadd.f32 %v349_v58, %v348_v55  ;;  %v351_v63 = vsel %vm328_vm0, %v860_v57, 0.0 }
  0x7c   : > { %v353_v0 = vsel %vm328_vm0, %v862_v61, 0.0  ;;  %437 = vst [vmem:[#allocation4] sm:$0xf] %v436_v3 }
  0x7d   : > { %v352_v2 = vadd.f32 %v351_v63, %v350_v62 }
  0x7f   : > { %v354_v4 = vadd.f32 %v353_v0, %v352_v2 }
  0x81   : > { %863 = vrcp.f32 %v354_v4 }
  0x83   : > { %v523_v5 = vld [vmem:[#allocation4] sm:$0xf] }
  0x84   : > { %524 = vst [vmem:[%s307_s6] sm:$0xf] %v523_v5  ;;  %s1078_s6 = smov [#allocation11]  }
  0x85   : > { %s929_s21 = sshll.u32 %s1078_s6, 4  ;;  %s930_s21 = int_to_ptr.vmem [resolvable:$false] %s929_s21 }
  0x86   : > { %s931_s26 = scalar_lea.vmem %s930_s21, 128  ;;  %p932_p7 = scmp.lt.s32.totalorder %s1335_s8, %s930_s21 }
  0x87   : > { %p933_p10 = scmp.lt.s32.totalorder %s931_s26, %s925_s9 }
  0x89   : > { %p934_p12 = por %p933_p10, %p932_p7 }
  0x8b   : > { %v864_v7 = vpop.eup %863  ;;  %p935_p9 = pnand %p934_p12, %p928_p4 }
  0x8c   : > { %v356_v12 = vmul.f32 %v864_v7, %v856_v52  ;;  %v357_v13 = vmul.f32 %v864_v7, %v858_v54  ;;  %v358_v14 = vmul.f32 %v864_v7, %v860_v57  ;;  %v359_v15 = vmul.f32 %v864_v7, %v862_v61 }
  0x8e   : > { %v384_v20 = vadd.f32 %v380_v6, %v356_v12  ;;  %v385_v21 = vadd.f32 %v381_v8, %v357_v13  ;;  %v386_v22 = vadd.f32 %v382_v9, %v358_v14  ;;  %v387_v23 = vadd.f32 %v383_v10, %v359_v15 }
  0x8f   : > { %v368_v24 = vsel %vm360_vm1, %v356_v12, 0.0  ;;  %v369_v25 = vsel %vm361_vm2, %v357_v13, 0.0  ;;  %v370_v26 = vsel %vm362_vm3, %v358_v14, 0.0  ;;  %v371_v27 = vsel %vm363_vm4, %v359_v15, 0.0 }
  0x90   : > { %388 = vst [vmem:[#allocation3] sm:$0x3] %v384_v20  ;;  %389 = vst [vmem:[#allocation3 + $0x2] sm:$0x3] %v385_v21  ;;  %v372_v28 = vadd.f32 %v368_v24, %v364_v16  ;;  %v373_v29 = vadd.f32 %v369_v25, %v365_v17  ;;  %v374_v30 = vadd.f32 %v370_v26, %v366_v18 }
  0x91   : > { %390 = vst [vmem:[#allocation3 + $0x4] sm:$0x3] %v386_v22  ;;  %391 = vst [vmem:[#allocation3 + $0x6] sm:$0x3] %v387_v23  ;;  %v375_v31 = vadd.f32 %v371_v27, %v367_v19 }
  0x92   : > { %376 = vst [vmem:[#allocation2] sm:$0x3] %v372_v28  ;;  %377 = vst [vmem:[#allocation2 + $0x2] sm:$0x3] %v373_v29 }
  0x93   : > { %378 = vst [vmem:[#allocation2 + $0x4] sm:$0x3] %v374_v30  ;;  %379 = vst [vmem:[#allocation2 + $0x6] sm:$0x3] %v375_v31 }
  0x97   : > { %v482_v32 = vld [vmem:[#allocation3] sm:$0x3]  ;;  %v483_v33 = vld [vmem:[#allocation3 + $0x2] sm:$0x3] }
  0x98   : > { %v484_v34 = vld [vmem:[#allocation3 + $0x4] sm:$0x3]  ;;  %v485_v35 = vld [vmem:[#allocation3 + $0x6] sm:$0x3]  ;;  %v486_v36 = vsel %vm328_vm0, %v482_v32, 0.0  ;;  %v493_v11 = vsel %vm328_vm0, %v483_v33, 0.0 }
  0x99   : > { %v500_v37 = vsel %vm328_vm0, %v484_v34, 0.0  ;;  %v487_v38 = vrot.slane %v486_v36, 4  ;;  %v494_v39 = vrot.slane %v493_v11, 4  ;;  %v507_v41 = vsel %vm328_vm0, %v485_v35, 0.0  ;;  %v441_v42 = vld [vmem:[#allocation2] sm:$0x3] }
  0x9a   : > { %v501_v40 = vrot.slane %v500_v37, 4  ;;  %v508_v43 = vrot.slane %v507_v41, 4  ;;  %v442_v44 = vld [vmem:[#allocation2 + $0x2] sm:$0x3]  ;;  %v443_v45 = vld [vmem:[#allocation2 + $0x4] sm:$0x3] }
  0x9b   : > { %v445_v46 = vsel %vm328_vm0, %v441_v42, 0.0  ;;  %v488_v47 = vadd.f32 %v487_v38, %v486_v36  ;;  %v495_v48 = vadd.f32 %v494_v39, %v493_v11  ;;  %v444_v50 = vld [vmem:[#allocation2 + $0x6] sm:$0x3]  ;;  %v452_v53 = vsel %vm328_vm0, %v442_v44, 0.0 }
  0x9c   : > { %v502_v49 = vadd.f32 %v501_v40, %v500_v37  ;;  %v446_v51 = vrot.slane %v445_v46, 4  ;;  %v509_v52 = vadd.f32 %v508_v43, %v507_v41  ;;  %v459_v54 = vsel %vm328_vm0, %v443_v45, 0.0 }
  0x9d   : > { %v466_v55 = vsel %vm328_vm0, %v444_v50, 0.0  ;;  %v489_v56 = vrot.slane %v488_v47, 2  ;;  %v496_v57 = vrot.slane %v495_v48, 2  ;;  %v453_v61 = vrot.slane %v452_v53, 4 }
  0x9e   : > { %v503_v58 = vrot.slane %v502_v49, 2  ;;  %v447_v59 = vadd.f32 %v446_v51, %v445_v46  ;;  %v510_v60 = vrot.slane %v509_v52, 2  ;;  %v460_v62 = vrot.slane %v459_v54, 4 }
  0x9f   : > { %v467_v63 = vrot.slane %v466_v55, 4  ;;  %v490_v0 = vadd.f32 %v489_v56, %v488_v47  ;;  %v497_v1 = vadd.f32 %v496_v57, %v495_v48  ;;  %v454_v5 = vadd.f32 %v453_v61, %v452_v53 }
  0xa0   : > { %v504_v2 = vadd.f32 %v503_v58, %v502_v49  ;;  %v448_v3 = vrot.slane %v447_v59, 2  ;;  %v511_v4 = vadd.f32 %v510_v60, %v509_v52  ;;  %v461_v6 = vadd.f32 %v460_v62, %v459_v54 }
  0xa1   : > { %v468_v7 = vadd.f32 %v467_v63, %v466_v55  ;;  %v491_v8 = vrot.slane %v490_v0, 1  ;;  %v498_v9 = vrot.slane %v497_v1, 1  ;;  %v455_v14 = vrot.slane %v454_v5, 2 }
  0xa2   : > { %v505_v10 = vrot.slane %v504_v2, 1  ;;  %v449_v12 = vadd.f32 %v448_v3, %v447_v59  ;;  %v512_v13 = vrot.slane %v511_v4, 1  ;;  %v462_v15 = vrot.slane %v461_v6, 2 }
  0xa3   : > { %v469_v16 = vrot.slane %v468_v7, 2  ;;  %v492_v17 = vadd.f32 %v491_v8, %v490_v0  ;;  %v499_v18 = vadd.f32 %v498_v9, %v497_v1  ;;  %v456_v21 = vadd.f32 %v455_v14, %v454_v5 }
  0xa4   : > { %v506_v19 = vadd.f32 %v505_v10, %v504_v2  ;;  %v450_v20 = vrot.slane %v449_v12, 1  ;;  %v463_v22 = vadd.f32 %v462_v15, %v461_v6  ;;  %v513_v24 = vadd.f32 %v512_v13, %v511_v4 }
  0xa5   : > { %v470_v23 = vadd.f32 %v469_v16, %v468_v7  ;;  %v518_v25 = vsel %vm429_vm5, %v499_v18, %v492_v17  ;;  %v457_v28 = vrot.slane %v456_v21, 1 }
  0xa6   : > { %v451_v26 = vadd.f32 %v450_v20, %v449_v12  ;;  %v519_v27 = vsel %vm431_vm6, %v506_v19, %v518_v25  ;;  %v464_v29 = vrot.slane %v463_v22, 1 }
  0xa7   : > { %v471_v30 = vrot.slane %v470_v23, 1  ;;  %v520_v31 = vsel %vm433_vm7, %v513_v24, %v519_v27  ;;  %v458_v32 = vadd.f32 %v457_v28, %v456_v21 }
  0xa8   : > { %522 = vst [vmem:[%s300_s10] sm:$0xf] %v520_v31  ;;  %v465_v33 = vadd.f32 %v464_v29, %v463_v22 }
  0xa9   : > { %938 = shalt.err (!%p935_p9)
}
  0xaa   : > { %s939_s10 = scalar_lea.hbm %s1345_s14, 64  ;;  %s943_s25 = scalar_lea.hbm %s1467_s3, 128 }
  0xab   : > { %p940_p1 = scmp.ne.s32.totalorder %s1345_s14, %s939_s10  ;;  %p944_p5 = scmp.lt.u32.totalorder %s1345_s14, %s1467_s3 }
  0xac   : > { %p945_p13 = scmp.lt.u32.totalorder %s943_s25, %s939_s10  ;;  %p947_p8 = scmp.lt.u32.totalorder %s939_s10, %s1345_s14 }
  0xad   : > { %p941_p6 = pnand %p940_p1, %p1483_p0 }
  0xae   : > { %p946_p3 = por %p945_p13, %p944_p5 }
  0xaf   : > { %p942_p2 = pneg %p941_p6 }
  0xb0   : > { %p948_p11 = por %p947_p8, %p946_p3 }
  0xb2   : > { %p949_p4 = pnand %p948_p11, %p942_p2 }
  0xb4   : > { %952 = shalt.err (!%p949_p4)
}
  0xb5   : > { %780 = dma.vmem_to_hbm [thread:$0]  (%p1483_p0), %s1335_s8, 64, %s1345_s14, %s1360_s13   ;;  %v472_v34 = vadd.f32 %v471_v30, %v470_v23  ;;  %v477_v35 = vsel %vm429_vm5, %v458_v32, %v451_v26 }
  0xb6   : > { %s953_s9 = scalar_lea.vmem %s1348_s5, 64  ;;  %s1079_s26 = smov [#allocation13]  }
  0xb7   : > { %p954_p7 = scmp.ne.s32.totalorder %s1348_s5, %s953_s9  ;;  %s957_s10 = sshll.u32 %s1079_s26, 4  ;;  %s958_s10 = int_to_ptr.vmem [resolvable:$false] %s957_s10 }
  0xb8   : > { %s959_s11 = scalar_lea.vmem %s958_s10, 128  ;;  %p960_p9 = scmp.lt.s32.totalorder %s1348_s5, %s958_s10 }
  0xb9   : > { %p955_p10 = pnand %p954_p7, %p1483_p0  ;;  %p961_p1 = scmp.lt.s32.totalorder %s959_s11, %s953_s9 }
  0xbb   : > { %p956_p12 = pneg %p955_p10  ;;  %p962_p6 = por %p961_p1, %p960_p9 }
  0xbd   : > { %p963_p2 = pnand %p962_p6, %p956_p12 }
  0xbf   : > { %966 = shalt.err (!%p963_p2)
}
  0xc0   : > { %s967_s8 = scalar_lea.hbm %s1354_s0, 64  ;;  %s971_s25 = scalar_lea.hbm %s1468_s4, 128 }
  0xc1   : > { %p968_p5 = scmp.ne.s32.totalorder %s1354_s0, %s967_s8  ;;  %p972_p8 = scmp.lt.u32.totalorder %s1354_s0, %s1468_s4 }
  0xc2   : > { %p973_p11 = scmp.lt.u32.totalorder %s971_s25, %s967_s8  ;;  %p975_p7 = scmp.lt.u32.totalorder %s967_s8, %s1354_s0 }
  0xc3   : > { %p969_p13 = pnand %p968_p5, %p1483_p0 }
  0xc4   : > { %p974_p4 = por %p973_p11, %p972_p8 }
  0xc5   : > { %p970_p3 = pneg %p969_p13 }
  0xc6   : > { %p976_p10 = por %p975_p7, %p974_p4 }
  0xc8   : > { %p977_p12 = pnand %p976_p10, %p970_p3 }
  0xca   : > { %980 = shalt.err (!%p977_p12)
}
  0xcb   : > { %781 = dma.vmem_to_hbm [thread:$0]  (%p1483_p0), %s1348_s5, 64, %s1354_s0, %s1360_s13   ;;  %v478_v36 = vsel %vm431_vm6, %v465_v33, %v477_v35 }
  0xcc   : > { %s1412_s10 = scalar_lea.hbm %s1466_s2, %s1330_s22  ;;  %v479_v11 = vsel %vm433_vm7, %v472_v34, %v478_v36  ;;  %s526_s11 = scalar_lea.sflag [#allocation7], %s1260_s12 }
  0xcd   : > { %481 = vst [vmem:[%s293_s7] sm:$0xf] %v479_v11  ;;  %s981_s8 = scalar_lea.vmem %s1358_s18, 64  ;;  %s1080_s14 = smov [#allocation10]  }
  0xce   : > { %p982_p9 = scmp.ne.s32.totalorder %s1358_s18, %s981_s8  ;;  %s985_s24 = sshll.u32 %s1080_s14, 4  ;;  %s986_s24 = int_to_ptr.vmem [resolvable:$false] %s985_s24 }
  0xcf   : > { %s987_s5 = scalar_lea.vmem %s986_s24, 128  ;;  %p988_p2 = scmp.lt.s32.totalorder %s1358_s18, %s986_s24 }
  0xd0   : > { %p983_p1 = pnand %p982_p9, %p1483_p0  ;;  %p989_p5 = scmp.lt.s32.totalorder %s987_s5, %s981_s8 }
  0xd2   : > { %p984_p6 = pneg %p983_p1  ;;  %p990_p13 = por %p989_p5, %p988_p2 }
  0xd4   : > { %p991_p3 = pnand %p990_p13, %p984_p6 }
  0xd6   : > { %994 = shalt.err (!%p991_p3)
}
  0xd7   : > { %s995_s12 = scalar_lea.hbm %s1412_s10, 64  ;;  %s999_s7 = scalar_lea.hbm %s1466_s2, 128 }
  0xd8   : > { %p996_p8 = scmp.ne.s32.totalorder %s1412_s10, %s995_s12  ;;  %p1000_p7 = scmp.lt.u32.totalorder %s1412_s10, %s1466_s2 }
  0xd9   : > { %p1001_p10 = scmp.lt.u32.totalorder %s999_s7, %s995_s12  ;;  %p1003_p9 = scmp.lt.u32.totalorder %s995_s12, %s1412_s10 }
  0xda   : > { %p997_p11 = pnand %p996_p8, %p1483_p0 }
  0xdb   : > { %p1002_p12 = por %p1001_p10, %p1000_p7 }
  0xdc   : > { %p998_p4 = pneg %p997_p11 }
  0xdd   : > { %p1004_p1 = por %p1003_p9, %p1002_p12 }
  0xdf   : > { %p1005_p6 = pnand %p1004_p1, %p998_p4 }
  0xe1   : > { %1008 = shalt.err (!%p1005_p6)
}
  0xe2   : > { %779 = dma.vmem_to_hbm [thread:$0]  (%p1483_p0), %s1358_s18, 64, %s1412_s10, %s526_s11  }
  0xe3 PF: > { %s590_s25 = sand.u32 1, %s1051_s15   ;;  %p1484_p2 = scmp.ne.s32.totalorder %s1476_s30, 0 }
  0xe4   : > { %p1485_p5 = scmp.ge.s32.totalorder %s1071_s20, 2  ;;  %s591_s6 = scalar_lea.sflag [#allocation7], %s590_s25 }
  0xe6   : > { %p793_p13 = pnand %p1485_p5, %p1484_p2 }
  0xe8   : > { %1042 = dma.done.wait (!%p793_p13), %s591_s6, 64  }
  0xe9   : > { %1044 = vsyncadd (!%p793_p13), %s591_s6, 4294967232  ;;  %s1486_s21 = sadd.s32 4294967294, %s1071_s20  }
  0xea   : > { %s599_s9 = sand.u32 1, %s1486_s21  }
  0xeb   : > { %s600_s26 = scalar_lea.sflag [#allocation12], %s599_s9 }
  0xec   : > { %1046 = dma.done.wait (!%p793_p13), %s600_s26, 128  }
  0xed   : > { %1048 = vsyncadd (!%p793_p13), %s600_s26, 4294967168  ;;  %s27_s20 = sadd.s32 1, %s1071_s20   ;;  %s1487_s15 = smov %s1055_s16 }
  0xee   : > { %p24_p0 = scmp.ge.s32.totalorder %s27_s20, 4   ;;  %s1488_s16 = smov %s1059_s17 }
  0xef   : > { %s1489_s17 = smov %s1168_s29  ;;  %s1490_s18 = smov %s1067_s19 }
  0xf0   : > { %s1491_s19 = smov %s1493_s23  ;;  %26 = sbr.rel (!%p24_p0) target bundleno = 12 (0xc), region = 126 }
  0xf7   :  { %614 = vsyncpa [#allocation6], 1 }
  0xf8   :  { %616 = vsyncpa [#allocation6 + $0x1], 1 }
  0xf9   :  { %617 = vsyncpa [#allocation9], 1 }
  0xfa   :  { %619 = vsyncpa [#allocation9 + $0x1], 1 }
  0xfb   :  { %620 = vsyncpa [#allocation7], 1 }
  0xfc   :  { %622 = vsyncpa [#allocation7 + $0x1], 1 }
  0xfd   :  { %623 = vsyncpa [#allocation12], 1 }
  0xfe   :  { %625 = vsyncpa [#allocation12 + $0x1], 1 }

</bundles_post_ra>
